<compile_context>
chip_gen: v7x
topology: tpu7x:2x2x1
jax: 0.10.0
libtpu: 0.0.40
codegen_flags: <defaults>
</compile_context>

<pallas_src>
import jax
import jax.numpy as jnp
from jax.experimental import pallas as pl
from jax.experimental.pallas import tpu as pltpu

IN_DIM = 28 * 28        # 784
H1, H1P = 300, 384      # logical / lane-padded hidden sizes
H2, H2P = 100, 128
OUT, OUTP = 10, 128


def _mlp_kernel(x_ref, w1_ref, b1_ref, w2_ref, b2_ref, w3_ref, b3_ref, o_ref):
    # On-chip bf16 cast of the f32 x tile (rides free VPU slack on a
    # mem-bound kernel; avoids a separate wrapper cast pass over HBM).
    x = x_ref[...].astype(jnp.bfloat16)
    # fc1 + relu  (bf16 MXU inputs, f32 accumulate, f32 elementwise)
    h1 = jnp.dot(x, w1_ref[...], preferred_element_type=jnp.float32)
    h1 = jnp.maximum(h1 + b1_ref[...], 0.0)
    # fc2 + relu
    h2 = jnp.dot(h1.astype(jnp.bfloat16), w2_ref[...],
                 preferred_element_type=jnp.float32)
    h2 = jnp.maximum(h2 + b2_ref[...], 0.0)
    # fc3 (logits, no activation) -> bf16 writeback (lane-dense 128 cols)
    out = jnp.dot(h2.astype(jnp.bfloat16), w3_ref[...],
                  preferred_element_type=jnp.float32)
    o_ref[...] = (out + b3_ref[...]).astype(o_ref.dtype)


def _prepare_kernel_params(params):
    """Zero-pad to lane-aligned dims; weights -> bf16, biases stay f32."""
    def padw(w, pin, pout):
        fi, fo = w.shape
        return jnp.pad(w, ((0, pin - fi), (0, pout - fo))).astype(jnp.bfloat16)

    def padb(b, pout):
        return jnp.pad(b, ((0, 0), (0, pout - b.shape[1]))).astype(jnp.float32)

    return (
        padw(params["w1"], IN_DIM, H1P), padb(params["b1"], H1P),
        padw(params["w2"], H1P, H2P),    padb(params["b2"], H2P),
        padw(params["w3"], H2P, OUTP),   padb(params["b3"], OUTP),
    )


def net_forward(x, params, *, batch_tile=1024):
    """x: (B, 784) float32; params: dict of w1,b1,w2,b2,w3,b3 (logical shapes)."""
    B = x.shape[0]
    kparams = _prepare_kernel_params(params)

    # Batch tile: large to amortize per-step overhead (~0.35 us/step), but keep
    # >= 2 grid steps when the batch allows so v7x megacore can shard the
    # "parallel" batch axis across both TensorCores.  Round to 16 rows (bf16
    # packs two rows per sublane).
    TB = batch_tile
    if B > 16:
        TB = min(TB, pl.cdiv(B, 2))
    else:
        TB = min(TB, 16)
    TB = max(16, pl.cdiv(TB, 16) * 16)

    x_in = x.astype(jnp.float32)
    if B < TB:
        # Tiny-batch path only: pad a handful of rows (cheap) so the single
        # block divides.  Larger ragged batches rely on Pallas boundary
        # masking of the last block (padded rows' logits are discarded below).
        x_in = jnp.pad(x_in, ((0, TB - B), (0, 0)))
    B_in = x_in.shape[0]
    grid = (pl.cdiv(B_in, TB),)

    resident = lambda shape: pl.BlockSpec(shape, lambda i: (0, 0))

    flops = 2 * B * (IN_DIM * H1 + H1 * H2 + H2 * OUT)
    weight_bytes = (IN_DIM * H1P + H1P * H2P + H2P * OUTP) * 2 \
                   + (H1P + H2P + OUTP) * 4
    bytes_accessed = B_in * IN_DIM * 4 + B_in * OUTP * 2 + weight_bytes

    out_pad = pl.pallas_call(
        _mlp_kernel,
        out_shape=jax.ShapeDtypeStruct((B_in, OUTP), jnp.bfloat16),
        grid=grid,
        in_specs=[
            pl.BlockSpec((TB, IN_DIM), lambda i: (i, 0)),   # x: tiled over batch
            resident((IN_DIM, H1P)), resident((1, H1P)),    # weights/biases resident
            resident((H1P, H2P)),    resident((1, H2P)),
            resident((H2P, OUTP)),   resident((1, OUTP)),
        ],
        out_specs=pl.BlockSpec((TB, OUTP), lambda i: (i, 0)),
        compiler_params=pltpu.CompilerParams(
            dimension_semantics=("parallel",),
            vmem_limit_bytes=32 << 20),
        cost_estimate=pl.CostEstimate(
            flops=flops, transcendentals=0, bytes_accessed=bytes_accessed),
    )(x_in, *kparams)

    return out_pad[:B, :OUT].astype(jnp.float32)


def init_params(key):
    """Deterministic init mimicking PyTorch nn.Linear default U(-1/sqrt(in), 1/sqrt(in))."""
    dims = [(IN_DIM, H1), (H1, H2), (H2, OUT)]
    params = {}
    for idx, (fan_in, fan_out) in enumerate(dims, start=1):
        key, kw, kb = jax.random.split(key, 3)
        bound = 1.0 / (fan_in ** 0.5)
        params[f"w{idx}"] = jax.random.uniform(
            kw, (fan_in, fan_out), jnp.float32, -bound, bound)
        params[f"b{idx}"] = jax.random.uniform(
            kb, (1, fan_out), jnp.float32, -bound, bound)
    return params


def _reference_bf16(x, params):
    """Mirror the kernel arithmetic (bf16 dot inputs, f32 accumulation, bf16 logits)."""
    def dot(a, w):
        return jnp.dot(a.astype(jnp.bfloat16), w.astype(jnp.bfloat16),
                       preferred_element_type=jnp.float32)
    h1 = jnp.maximum(dot(x, params["w1"]) + params["b1"], 0.0)
    h2 = jnp.maximum(dot(h1, params["w2"]) + params["b2"], 0.0)
    out = dot(h2, params["w3"]) + params["b3"]
    return out.astype(jnp.bfloat16).astype(jnp.float32)


def _reference_f32(x, params):
    h1 = jnp.maximum(x @ params["w1"] + params["b1"], 0.0)
    h2 = jnp.maximum(h1 @ params["w2"] + params["b2"], 0.0)
    return h2 @ params["w3"] + params["b3"]


if __name__ == "__main__":
    key = jax.random.PRNGKey(0)
    key, kx = jax.random.split(key)

    B = 2                                                   # small batch
    x = jax.random.normal(kx, (B, IN_DIM), jnp.float32)     # flattened MNIST-style input
    params = init_params(key)

    out = net_forward(x, params)
    out = jax.block_until_ready(out)
    assert out.shape == (B, OUT)

    # Tight check vs. a reference that mirrors the kernel's bf16 arithmetic
    # (bf16 dots, f32 accumulation, bf16 logits writeback).
    ref_bf16 = _reference_bf16(x, params)
    assert jnp.allclose(out, ref_bf16, atol=1e-2, rtol=1e-2)

    # Loose sanity check vs. the pure-f32 PyTorch-equivalent forward.
    ref_f32 = _reference_f32(x, params)
    assert jnp.allclose(out, ref_f32, atol=1e-1, rtol=1e-1)

    print("KERNEL_OK")
</pallas_src>

<mosaic_0001>
module attributes {stable_mosaic.version = 11 : i64} {
  func.func @_mlp_kernel(%arg0: i32, %arg1: memref<16x784xf32, #tpu.memory_space<vmem>>, %arg2: memref<784x384xbf16, #tpu.memory_space<vmem>>, %arg3: memref<1x384xf32, #tpu.memory_space<vmem>>, %arg4: memref<384x128xbf16, #tpu.memory_space<vmem>>, %arg5: memref<1x128xf32, #tpu.memory_space<vmem>>, %arg6: memref<128x128xbf16, #tpu.memory_space<vmem>>, %arg7: memref<1x128xf32, #tpu.memory_space<vmem>>, %arg8: memref<16x128xbf16, #tpu.memory_space<vmem>>) attributes {dimension_semantics = [#tpu.dimension_semantics<parallel>], iteration_bounds = array<i64: 1>, scalar_prefetch = 0 : i64, scratch_operands = 0 : i64, tpu.core_type = #tpu.core_type<tc>, window_params = [{transform_indices = @transform_0, window_bounds = array<i64: 16, 784>}, {pipeline_mode = #tpu.pipeline_mode<synchronous>, transform_indices = @transform_1, window_bounds = array<i64: 784, 384>}, {pipeline_mode = #tpu.pipeline_mode<synchronous>, transform_indices = @transform_2, window_bounds = array<i64: 1, 384>}, {pipeline_mode = #tpu.pipeline_mode<synchronous>, transform_indices = @transform_3, window_bounds = array<i64: 384, 128>}, {pipeline_mode = #tpu.pipeline_mode<synchronous>, transform_indices = @transform_4, window_bounds = array<i64: 1, 128>}, {pipeline_mode = #tpu.pipeline_mode<synchronous>, transform_indices = @transform_5, window_bounds = array<i64: 128, 128>}, {pipeline_mode = #tpu.pipeline_mode<synchronous>, transform_indices = @transform_6, window_bounds = array<i64: 1, 128>}, {transform_indices = @transform_7, window_bounds = array<i64: 16, 128>}]} {
    %c0 = arith.constant 0 : index
    %c0_0 = arith.constant 0 : index
    %0 = vector.load %arg1[%c0, %c0_0] : memref<16x784xf32, #tpu.memory_space<vmem>>, vector<16x784xf32>
    %1 = arith.truncf %0 : vector<16x784xf32> to vector<16x784xbf16>
    %c0_1 = arith.constant 0 : index
    %c0_2 = arith.constant 0 : index
    %2 = vector.load %arg2[%c0_1, %c0_2] : memref<784x384xbf16, #tpu.memory_space<vmem>>, vector<784x384xbf16>
    %cst = arith.constant dense<0.000000e+00> : vector<16x384xf32>
    %3 = tpu.matmul %1, %2, %cst {dimension_numbers = #tpu.dot_dimension_numbers<[1], [0], [0], [1], [0, 0, 1, 1], [], []>} : vector<16x784xbf16>, vector<784x384xbf16>, vector<16x384xf32> -> vector<16x384xf32>
    %c0_3 = arith.constant 0 : index
    %c0_4 = arith.constant 0 : index
    %4 = vector.load %arg3[%c0_3, %c0_4] : memref<1x384xf32, #tpu.memory_space<vmem>>, vector<1x384xf32>
    %5 = vector.broadcast %4 : vector<1x384xf32> to vector<16x384xf32>
    %6 = arith.addf %3, %5 : vector<16x384xf32>
    %cst_5 = arith.constant 0.000000e+00 : f32
    %7 = vector.broadcast %cst_5 : f32 to vector<16x384xf32>
    %8 = arith.maximumf %6, %7 : vector<16x384xf32>
    %9 = arith.truncf %8 : vector<16x384xf32> to vector<16x384xbf16>
    %c0_6 = arith.constant 0 : index
    %c0_7 = arith.constant 0 : index
    %10 = vector.load %arg4[%c0_6, %c0_7] : memref<384x128xbf16, #tpu.memory_space<vmem>>, vector<384x128xbf16>
    %cst_8 = arith.constant dense<0.000000e+00> : vector<16x128xf32>
    %11 = tpu.matmul %9, %10, %cst_8 {dimension_numbers = #tpu.dot_dimension_numbers<[1], [0], [0], [1], [0, 0, 1, 1], [], []>} : vector<16x384xbf16>, vector<384x128xbf16>, vector<16x128xf32> -> vector<16x128xf32>
    %c0_9 = arith.constant 0 : index
    %c0_10 = arith.constant 0 : index
    %12 = vector.load %arg5[%c0_9, %c0_10] : memref<1x128xf32, #tpu.memory_space<vmem>>, vector<1x128xf32>
    %13 = vector.broadcast %12 : vector<1x128xf32> to vector<16x128xf32>
    %14 = arith.addf %11, %13 : vector<16x128xf32>
    %cst_11 = arith.constant 0.000000e+00 : f32
    %15 = vector.broadcast %cst_11 : f32 to vector<16x128xf32>
    %16 = arith.maximumf %14, %15 : vector<16x128xf32>
    %17 = arith.truncf %16 : vector<16x128xf32> to vector<16x128xbf16>
    %c0_12 = arith.constant 0 : index
    %c0_13 = arith.constant 0 : index
    %18 = vector.load %arg6[%c0_12, %c0_13] : memref<128x128xbf16, #tpu.memory_space<vmem>>, vector<128x128xbf16>
    %cst_14 = arith.constant dense<0.000000e+00> : vector<16x128xf32>
    %19 = tpu.matmul %17, %18, %cst_14 {dimension_numbers = #tpu.dot_dimension_numbers<[1], [0], [0], [1], [0, 0, 1, 1], [], []>} : vector<16x128xbf16>, vector<128x128xbf16>, vector<16x128xf32> -> vector<16x128xf32>
    %c0_15 = arith.constant 0 : index
    %c0_16 = arith.constant 0 : index
    %20 = vector.load %arg7[%c0_15, %c0_16] : memref<1x128xf32, #tpu.memory_space<vmem>>, vector<1x128xf32>
    %21 = vector.broadcast %20 : vector<1x128xf32> to vector<16x128xf32>
    %22 = arith.addf %19, %21 : vector<16x128xf32>
    %23 = arith.truncf %22 : vector<16x128xf32> to vector<16x128xbf16>
    %c0_17 = arith.constant 0 : index
    %c0_18 = arith.constant 0 : index
    %24 = vector.load %arg8[%c0_17, %c0_18] : memref<16x128xbf16, #tpu.memory_space<vmem>>, vector<16x128xbf16>
    tpu.vector_store %arg8[%c0_17, %c0_18], %23 {strides = array<i32>} : memref<16x128xbf16, #tpu.memory_space<vmem>>, vector<16x128xbf16>,
    return
  }
  func.func @transform_0(%arg0: i32) -> (i32, i32) {
    %c0_i32 = arith.constant 0 : i32
    %c0_i32_0 = arith.constant 0 : i32
    return %arg0, %c0_i32 : i32, i32
  }
  func.func @transform_1(%arg0: i32) -> (i32, i32) {
    %c0_i32 = arith.constant 0 : i32
    %c0_i32_0 = arith.constant 0 : i32
    %c0_i32_1 = arith.constant 0 : i32
    return %c0_i32, %c0_i32_0 : i32, i32
  }
  func.func @transform_2(%arg0: i32) -> (i32, i32) {
    %c0_i32 = arith.constant 0 : i32
    %c0_i32_0 = arith.constant 0 : i32
    %c0_i32_1 = arith.constant 0 : i32
    return %c0_i32, %c0_i32_0 : i32, i32
  }
  func.func @transform_3(%arg0: i32) -> (i32, i32) {
    %c0_i32 = arith.constant 0 : i32
    %c0_i32_0 = arith.constant 0 : i32
    %c0_i32_1 = arith.constant 0 : i32
    return %c0_i32, %c0_i32_0 : i32, i32
  }
  func.func @transform_4(%arg0: i32) -> (i32, i32) {
    %c0_i32 = arith.constant 0 : i32
    %c0_i32_0 = arith.constant 0 : i32
    %c0_i32_1 = arith.constant 0 : i32
    return %c0_i32, %c0_i32_0 : i32, i32
  }
  func.func @transform_5(%arg0: i32) -> (i32, i32) {
    %c0_i32 = arith.constant 0 : i32
    %c0_i32_0 = arith.constant 0 : i32
    %c0_i32_1 = arith.constant 0 : i32
    return %c0_i32, %c0_i32_0 : i32, i32
  }
  func.func @transform_6(%arg0: i32) -> (i32, i32) {
    %c0_i32 = arith.constant 0 : i32
    %c0_i32_0 = arith.constant 0 : i32
    %c0_i32_1 = arith.constant 0 : i32
    return %c0_i32, %c0_i32_0 : i32, i32
  }
  func.func @transform_7(%arg0: i32) -> (i32, i32) {
    %c0_i32 = arith.constant 0 : i32
    %c0_i32_0 = arith.constant 0 : i32
    return %arg0, %c0_i32 : i32, i32
  }
}

</mosaic_0001>

<bundles_post_ra>
// kernel: tpu_custom_call.1
= control target key start
LH: loop header
LB: loop body
LE: loop exit
PB: predicated region body
PF: predicated region fallthrough
CT: control target
= control target key end

     0   :  { %12 = vsyncpa [#allocation3], 0  ;;  %s2766_s0 = inlined_call_operand.hbm [shape: f32[16,784], index: 0, kind: input, shape index: {}]   ;;  %s2767_s1 = inlined_call_operand.hbm [shape: bf16[784,384], index: 1, kind: input, shape index: {}]   ;;  %s2768_s2 = inlined_call_operand.vmem [shape: f32[1,384], index: 2, kind: input, shape index: {}]   ;;  %s2769_s3 = inlined_call_operand.hbm [shape: bf16[384,128], index: 3, kind: input, shape index: {}]   ;;  %s2770_s4 = inlined_call_operand.vmem [shape: f32[1,128], index: 4, kind: input, shape index: {}]   ;;  %s2771_s5 = inlined_call_operand.hbm [shape: bf16[128,128], index: 5, kind: input, shape index: {}]   ;;  %s2772_s6 = inlined_call_operand.vmem [shape: f32[1,128], index: 6, kind: input, shape index: {}]   ;;  %s2773_s7 = inlined_call_operand.hbm [shape: bf16[16,128], index: 7, kind: output, shape index: {}]  }
   0x1   :  { %13 = vsyncpa [#allocation6], 0 }
   0x2   :  { %14 = vsyncpa [#allocation9], 0 }
   0x3   :  { %15 = vsyncpa [#allocation4], 0  ;;  %s2597_s24 = smov [#allocation5]   ;;  %s2479_s28 = scalar_lea.hbm %s2767_s1, 18816 }
   0x4   :  { %s33_s25 = sshll.u32 %s2597_s24, 4  ;;  %p2480_p0 = scmp.ne.s32.totalorder %s2767_s1, %s2479_s28  ;;  %s34_s25 = int_to_ptr.vmem [resolvable:$true] %s33_s25 }
   0x5   :  { %p2483_p1 = scmp.lt.u32.totalorder %s2479_s28, %s2767_s1 }
   0x7   :  { %p2485_p2 = pnand %p2483_p1, %p2480_p0 }
   0x9   :  { %2488 = shalt.err (!%p2485_p2)
}
   0xa   :  { %s2489_s10 = scalar_lea.vmem %s34_s25, 18816  ;;  %p2494_p4 = scmp.lt.s32.totalorder %s34_s25, %s34_s25 }
   0xb   :  { %p2490_p3 = scmp.ne.s32.totalorder %s34_s25, %s2489_s10  ;;  %p2495_p5 = scmp.lt.s32.totalorder %s2489_s10, %s2489_s10 }
   0xd   :  { %p2496_p6 = por %p2495_p5, %p2494_p4 }
   0xf   :  { %p2497_p7 = pnand %p2496_p6, %p2490_p3 }
  0x11   :  { %2500 = shalt.err (!%p2497_p7)
}
  0x12   :  { %s2598_s11 = smov 192   ;;  %s2599_s12 = smov 12  }
  0x13   :  { %39 = dma.hbm_to_vmem [thread:$0]  %s2767_s1, 18816, %s34_s25, [#allocation6], %s2598_s11, %s2598_s11, %s2599_s12  }
  0x14   :  { %s2600_s15 = smov [#allocation2]   ;;  %s2501_s19 = scalar_lea.hbm %s2766_s0, 1792 }
  0x15   :  { %s21_s16 = sshll.u32 %s2600_s15, 4  ;;  %p2502_p8 = scmp.ne.s32.totalorder %s2766_s0, %s2501_s19  ;;  %s22_s16 = int_to_ptr.vmem [resolvable:$true] %s21_s16 }
  0x16   :  { %p2505_p9 = scmp.lt.u32.totalorder %s2501_s19, %s2766_s0 }
  0x18   :  { %p2507_p10 = pnand %p2505_p9, %p2502_p8 }
  0x1a   :  { %2510 = shalt.err (!%p2507_p10)
}
  0x1b   :  { %s2511_s24 = scalar_lea.vmem %s22_s16, 1792  ;;  %p2516_p12 = scmp.lt.s32.totalorder %s22_s16, %s22_s16 }
  0x1c   :  { %p2512_p11 = scmp.ne.s32.totalorder %s22_s16, %s2511_s24  ;;  %p2517_p13 = scmp.lt.s32.totalorder %s2511_s24, %s2511_s24 }
  0x1e   :  { %p2518_p0 = por %p2517_p13, %p2516_p12 }
  0x20   :  { %p2519_p1 = pnand %p2518_p0, %p2512_p11 }
  0x22   :  { %2522 = shalt.err (!%p2519_p1)
}
  0x23   :  { %s2601_s1 = smov 896   ;;  %s2602_s25 = smov 56  }
  0x24   :  { %27 = dma.hbm_to_vmem [thread:$0]  %s2766_s0, 1792, %s22_s16, [#allocation3], %s2601_s1, %s2601_s1, %s2602_s25  }
  0x25   :  { %s2603_s28 = smov [#allocation7]   ;;  %s2523_s9 = scalar_lea.hbm %s2769_s3, 3072 }
  0x26   :  { %s47_s29 = sshll.u32 %s2603_s28, 4  ;;  %p2524_p2 = scmp.ne.s32.totalorder %s2769_s3, %s2523_s9  ;;  %s48_s29 = int_to_ptr.vmem [resolvable:$true] %s47_s29 }
  0x27   :  { %p2527_p3 = scmp.lt.u32.totalorder %s2523_s9, %s2769_s3 }
  0x29   :  { %p2529_p4 = pnand %p2527_p3, %p2524_p2 }
  0x2b   :  { %2532 = shalt.err (!%p2529_p4)
}
  0x2c   :  { %s2533_s14 = scalar_lea.vmem %s48_s29, 3072  ;;  %p2538_p6 = scmp.lt.s32.totalorder %s48_s29, %s48_s29 }
  0x2d   :  { %p2534_p5 = scmp.ne.s32.totalorder %s48_s29, %s2533_s14  ;;  %p2539_p7 = scmp.lt.s32.totalorder %s2533_s14, %s2533_s14 }
  0x2f   :  { %p2540_p8 = por %p2539_p7, %p2538_p6 }
  0x31   :  { %p2541_p9 = pnand %p2540_p8, %p2534_p5 }
  0x33   :  { %2544 = shalt.err (!%p2541_p9)
}
  0x34   :  { %s2604_s0 = smov 64   ;;  %s2605_s15 = smov 4  }
  0x35   :  { %53 = dma.hbm_to_vmem [thread:$0]  %s2769_s3, 3072, %s48_s29, [#allocation6], %s2604_s0, %s2604_s0, %s2605_s15  }
  0x36   :  { %s2606_s18 = smov [#allocation8]   ;;  %s2545_s22 = scalar_lea.hbm %s2771_s5, 1024 }
  0x37   :  { %s61_s19 = sshll.u32 %s2606_s18, 4  ;;  %p2546_p10 = scmp.ne.s32.totalorder %s2771_s5, %s2545_s22  ;;  %s62_s19 = int_to_ptr.vmem [resolvable:$true] %s61_s19 }
  0x38   :  { %p2549_p11 = scmp.lt.u32.totalorder %s2545_s22, %s2771_s5 }
  0x3a   :  { %p2551_p12 = pnand %p2549_p11, %p2546_p10 }
  0x3c   :  { %2554 = shalt.err (!%p2551_p12)
}
  0x3d   :  { %s2555_s26 = scalar_lea.vmem %s62_s19, 1024  ;;  %p2560_p0 = scmp.lt.s32.totalorder %s62_s19, %s62_s19 }
  0x3e   :  { %p2556_p13 = scmp.ne.s32.totalorder %s62_s19, %s2555_s26  ;;  %p2561_p1 = scmp.lt.s32.totalorder %s2555_s26, %s2555_s26 }
  0x40   :  { %p2562_p2 = por %p2561_p1, %p2560_p0 }
  0x42   :  { %p2563_p3 = pnand %p2562_p2, %p2556_p13 }
  0x44   :  { %2566 = shalt.err (!%p2563_p3)
}
  0x45   :  { %67 = dma.hbm_to_vmem [thread:$0]  %s2771_s5, 1024, %s62_s19, [#allocation9], %s2604_s0, %s2604_s0, %s2605_s15  }
  0x46   :  { %2589 = dma.done.wait [#allocation3], 1792  }
  0x47   :  { %2590 = vsyncadd [#allocation3], 4294965504 }
  0x48   :  { %2591 = dma.done.wait [#allocation6], 21888  }
  0x49   :  { %2592 = vsyncadd [#allocation6], 4294945408 }
  0x4a   :  { %2593 = dma.done.wait [#allocation9], 1024  }
  0x4b   :  { %2594 = vsyncadd [#allocation9], 4294966272  ;;  %v2251_v0 = vld [vmem:[#allocation5 + $0x4] ss:$12 sps:$4 sm:$0xff]   ;;  %v2253_v1 = vld [vmem:[#allocation5] ss:$12 sps:$4 sm:$0xff]  }
  0x4c   :  { %1105 = vmatprep.subr.bf16.mxu0 %v2251_v0  ;;  %v2254_v2 = vld [vmem:[#allocation5 + $0x1c] ss:$12 sps:$4 sm:$0xff]   ;;  %v2256_v3 = vld [vmem:[#allocation5 + $0x18] ss:$12 sps:$4 sm:$0xff]   ;;  %v2257_v4 = vld [vmem:[#allocation5 + $0x34] ss:$12 sps:$4 sm:$0xff]  }
  0x4d   :  { %1106 = vmatpush1.bf16.msra.mxu0 %v2253_v1  ;;  %v2259_v5 = vld [vmem:[#allocation5 + $0x30] ss:$12 sps:$4 sm:$0xff]   ;;  %v2260_v6 = vld [vmem:[#allocation5 + $0x4c] ss:$12 sps:$4 sm:$0xff]   ;;  %v2262_v7 = vld [vmem:[#allocation5 + $0x48] ss:$12 sps:$4 sm:$0xff]  }
  0x4e   :  { %1107 = vmatprep.subr.bf16.mxu0 %v2254_v2  ;;  %v2263_v8 = vld [vmem:[#allocation5 + $0x64] ss:$12 sps:$4 sm:$0xff]   ;;  %v2265_v9 = vld [vmem:[#allocation5 + $0x60] ss:$12 sps:$4 sm:$0xff]   ;;  %v2266_v10 = vld [vmem:[#allocation5 + $0x7c] ss:$12 sps:$4 sm:$0xff]  }
  0x4f   :  { %v2268_v11 = vld [vmem:[#allocation5 + $0x78] ss:$12 sps:$4 sm:$0xff]   ;;  %v2269_v12 = vld [vmem:[#allocation5 + $0x94] ss:$12 sps:$4 sm:$0xff]   ;;  %v2271_v16 = vld [vmem:[#allocation5 + $0x90] ss:$12 sps:$4 sm:$0xff]  }
  0x50   :  { %v84_v13 = vld [vmem:[#allocation2 + $0x8] sm:$0xff]  ;;  %v91_v14 = vld [vmem:[#allocation2 + $0x40] sm:$0xff]  ;;  %v2310_v22 = vld [vmem:[#allocation5 + $0xe0] ss:$12 sps:$4 sm:$0xff]   ;;  %vm1101_vm0 = vcmask 130048   ;;  %vm2608_vm1 = vmmov 0  }
  0x51   :  { %1108 = vmatpush1.bf16.msra.mxu0 %v2256_v3  ;;  %v98_v15 = vpack.c.bf16 %v91_v14, %v84_v13  ;;  %v2272_v17 = vld [vmem:[#allocation5 + $0xac] ss:$12 sps:$4 sm:$0xff]   ;;  %v2274_v18 = vld [vmem:[#allocation5 + $0xa8] ss:$12 sps:$4 sm:$0xff]   ;;  %v2275_v21 = vld [vmem:[#allocation5 + $0xc4] ss:$12 sps:$4 sm:$0xff]  }
  0x52   :  { %1109 = vmatprep.subr.bf16.mxu0 %v2257_v4  ;;  %v2305_v19 = vld [vmem:[#allocation5 + $0xc8] ss:$12 sps:$4 sm:$0xff]   ;;  %v2311_v23 = vld [vmem:[#allocation5 + $0x20] ss:$12 sps:$4 sm:$0xff]   ;;  %v2315_v26 = vld [vmem:[#allocation5 + $0xf8] ss:$12 sps:$4 sm:$0xff]  }
  0x53   :  { %1137 = vmatprep.mubr.bf16.mxu0 %v98_v15  ;;  %1309 = vmatprep.mubr.bf16.mxu1 %v98_v15  ;;  %v2306_v20 = vld [vmem:[#allocation5 + $0x8] ss:$12 sps:$4 sm:$0xff]   ;;  %v2277_v24 = vld [vmem:[#allocation5 + $0xc0] ss:$12 sps:$4 sm:$0xff]   ;;  %v2316_v27 = vld [vmem:[#allocation5 + $0x38] ss:$12 sps:$4 sm:$0xff]  }
  0x54   :  { %2067 = vmatprep.subr.bf16.mxu1 %v2305_v19  ;;  %v2278_v25 = vld [vmem:[#allocation5 + $0xdc] ss:$12 sps:$4 sm:$0xff]   ;;  %v2280_v28 = vld [vmem:[#allocation5 + $0xd8] ss:$12 sps:$4 sm:$0xff]   ;;  %v2281_v29 = vld [vmem:[#allocation5 + $0xf4] ss:$12 sps:$4 sm:$0xff]  }
  0x55   :  { %1110 = vmatpush1.bf16.msra.mxu0 %v2259_v5  ;;  %2068 = vmatpush3.bf16.msra.mxu1 %v2306_v20  ;;  %v2320_v30 = vld [vmem:[#allocation5 + $0x110] ss:$12 sps:$4 sm:$0xff]   ;;  %v2325_v33 = vld [vmem:[#allocation5 + $0x128] ss:$12 sps:$4 sm:$0xff]   ;;  %v2284_v34 = vld [vmem:[#allocation5 + $0x10c] ss:$12 sps:$4 sm:$0xff]  }
  0x56   :  { %1111 = vmatprep.subr.bf16.mxu0 %v2260_v6  ;;  %2069 = vmatprep.subr.bf16.mxu1 %v2310_v22  ;;  %v2321_v31 = vld [vmem:[#allocation5 + $0x50] ss:$12 sps:$4 sm:$0xff]   ;;  %v2326_v35 = vld [vmem:[#allocation5 + $0x68] ss:$12 sps:$4 sm:$0xff]   ;;  %v2330_v36 = vld [vmem:[#allocation5 + $0x140] ss:$12 sps:$4 sm:$0xff]  }
  0x57   :  { %v2283_v32 = vld [vmem:[#allocation5 + $0xf0] ss:$12 sps:$4 sm:$0xff]   ;;  %v2286_v37 = vld [vmem:[#allocation5 + $0x108] ss:$12 sps:$4 sm:$0xff]   ;;  %v2331_v39 = vld [vmem:[#allocation5 + $0x80] ss:$12 sps:$4 sm:$0xff]  }
  0x58   :  { %v2287_v38 = vld [vmem:[#allocation5 + $0x124] ss:$12 sps:$4 sm:$0xff]   ;;  %v2289_v41 = vld [vmem:[#allocation5 + $0x120] ss:$12 sps:$4 sm:$0xff]   ;;  %v2290_v42 = vld [vmem:[#allocation5 + $0x13c] ss:$12 sps:$4 sm:$0xff]  }
  0x59   :  { %1112 = vmatpush1.bf16.msra.mxu0 %v2262_v7  ;;  %2070 = vmatpush3.bf16.msra.mxu1 %v2311_v23  ;;  %v2335_v40 = vld [vmem:[#allocation5 + $0x158] ss:$12 sps:$4 sm:$0xff]   ;;  %v2340_v44 = vld [vmem:[#allocation5 + $0x170] ss:$12 sps:$4 sm:$0xff]   ;;  %v2293_v46 = vld [vmem:[#allocation5 + $0x154] ss:$12 sps:$4 sm:$0xff]  }
  0x5a   :  { %1113 = vmatprep.subr.bf16.mxu0 %v2263_v8  ;;  %2071 = vmatprep.subr.bf16.mxu1 %v2315_v26  ;;  %v2336_v43 = vld [vmem:[#allocation5 + $0x98] ss:$12 sps:$4 sm:$0xff]   ;;  %v2295_v47 = vld [vmem:[#allocation5 + $0x150] ss:$12 sps:$4 sm:$0xff]   ;;  %v2345_v50 = vld [vmem:[#allocation5 + $0x248] ss:$12 sps:$4 sm:$0xff]  }
  0x5b   :  { %v2292_v45 = vld [vmem:[#allocation5 + $0x138] ss:$12 sps:$4 sm:$0xff]   ;;  %v83_v48 = vld [vmem:[#allocation2] sm:$0xff]  ;;  %v90_v51 = vld [vmem:[#allocation2 + $0x38] sm:$0xff] }
  0x5c   :  { %v2341_v49 = vld [vmem:[#allocation5 + $0xb0] ss:$12 sps:$4 sm:$0xff]   ;;  %v2296_v52 = vld [vmem:[#allocation5 + $0x16c] ss:$12 sps:$4 sm:$0xff]   ;;  %v2346_v53 = vld [vmem:[#allocation5 + $0x188] ss:$12 sps:$4 sm:$0xff]   ;;  %v97_v54 = vpack.c.bf16 %v90_v51, %v83_v48 }
  0x5d   :  { %1114 = vmatpush1.bf16.msra.mxu0 %v2265_v9  ;;  %2072 = vmatpush3.bf16.msra.mxu1 %v2316_v27  ;;  %v2350_v55 = vld [vmem:[#allocation5 + $0x260] ss:$12 sps:$4 sm:$0xff]   ;;  %v2298_v56 = vld [vmem:[#allocation5 + $0x168] ss:$12 sps:$4 sm:$0xff]   ;;  %v2301_v57 = vld [vmem:[#allocation5 + $0x184] ss:$12 sps:$4 sm:$0xff]  }
  0x5e   :  { %1115 = vmatprep.subr.bf16.mxu0 %v2266_v10  ;;  %2073 = vmatprep.subr.bf16.mxu1 %v2320_v30  ;;  %v2351_v58 = vld [vmem:[#allocation5 + $0x1a0] ss:$12 sps:$4 sm:$0xff]   ;;  %v2355_v59 = vld [vmem:[#allocation5 + $0x278] ss:$12 sps:$4 sm:$0xff]   ;;  %v2304_v61 = vld [vmem:[#allocation5 + $0x19c] ss:$12 sps:$4 sm:$0xff]  }
  0x5f   :  { %v2299_v60 = vld [vmem:[#allocation5 + $0x180] ss:$12 sps:$4 sm:$0xff]   ;;  %v2356_v62 = vld [vmem:[#allocation5 + $0x1b8] ss:$12 sps:$4 sm:$0xff]   ;;  %v2360_v63 = vld [vmem:[#allocation5 + $0x290] ss:$12 sps:$4 sm:$0xff]  }
  0x60   :  { %v2302_v0 = vld [vmem:[#allocation5 + $0x198] ss:$12 sps:$4 sm:$0xff]   ;;  %v2309_v1 = vld [vmem:[#allocation5 + $0x1b4] ss:$12 sps:$4 sm:$0xff]   ;;  %v2361_v2 = vld [vmem:[#allocation5 + $0x1d0] ss:$12 sps:$4 sm:$0xff]  }
  0x61   :  { %1116 = vmatpush1.bf16.msra.mxu0 %v2268_v11  ;;  %2074 = vmatpush3.bf16.msra.mxu1 %v2321_v31  ;;  %v2365_v3 = vld [vmem:[#allocation5 + $0x2a8] ss:$12 sps:$4 sm:$0xff]   ;;  %v2307_v4 = vld [vmem:[#allocation5 + $0x1b0] ss:$12 sps:$4 sm:$0xff]   ;;  %v2314_v5 = vld [vmem:[#allocation5 + $0x1cc] ss:$12 sps:$4 sm:$0xff]  }
  0x62   :  { %1117 = vmatprep.subr.bf16.mxu0 %v2269_v12  ;;  %2075 = vmatprep.subr.bf16.mxu1 %v2325_v33  ;;  %v2366_v6 = vld [vmem:[#allocation5 + $0x1e8] ss:$12 sps:$4 sm:$0xff]   ;;  %v2370_v7 = vld [vmem:[#allocation5 + $0x2c0] ss:$12 sps:$4 sm:$0xff]   ;;  %v2319_v12 = vld [vmem:[#allocation5 + $0x1e4] ss:$12 sps:$4 sm:$0xff]  }
  0x63   :  { %v86_v8 = vld [vmem:[#allocation2 + $0x18] sm:$0xff]  ;;  %v93_v9 = vld [vmem:[#allocation2 + $0x50] sm:$0xff]  ;;  %v2381_v22 = vld [vmem:[#allocation5 + $0x230] ss:$12 sps:$4 sm:$0xff]  }
  0x64   :  { %v2312_v10 = vld [vmem:[#allocation5 + $0x1c8] ss:$12 sps:$4 sm:$0xff]   ;;  %v100_v11 = vpack.c.bf16 %v93_v9, %v86_v8  ;;  %v2371_v13 = vld [vmem:[#allocation5 + $0x200] ss:$12 sps:$4 sm:$0xff]   ;;  %v2375_v14 = vld [vmem:[#allocation5 + $0x2d8] ss:$12 sps:$4 sm:$0xff]  }
  0x65   :  { %1118 = vmatpush1.bf16.msra.mxu0 %v2271_v16  ;;  %2076 = vmatpush3.bf16.msra.mxu1 %v2326_v35  ;;  %v2317_v15 = vld [vmem:[#allocation5 + $0x1e0] ss:$12 sps:$4 sm:$0xff]   ;;  %v2324_v16 = vld [vmem:[#allocation5 + $0x1fc] ss:$12 sps:$4 sm:$0xff]   ;;  %v2322_v19 = vld [vmem:[#allocation5 + $0x1f8] ss:$12 sps:$4 sm:$0xff]  }
  0x66   :  { %1119 = vmatprep.subr.bf16.mxu0 %v2272_v17  ;;  %2077 = vmatprep.subr.bf16.mxu1 %v2330_v36  ;;  %v2376_v17 = vld [vmem:[#allocation5 + $0x218] ss:$12 sps:$4 sm:$0xff]   ;;  %v2329_v20 = vld [vmem:[#allocation5 + $0x214] ss:$12 sps:$4 sm:$0xff]   ;;  %v2344_v35 = vld [vmem:[#allocation5 + $0x25c] ss:$12 sps:$4 sm:$0xff]  }
  0x67   :  { %v85_v23 = vld [vmem:[#allocation2 + $0x10] sm:$0xff]  ;;  %v2334_v26 = vld [vmem:[#allocation5 + $0x22c] ss:$12 sps:$4 sm:$0xff]   ;;  %v2386_v27 = vld [vmem:[#allocation5 + $0x308] ss:$12 sps:$4 sm:$0xff]  }
  0x68   :  { %v2332_v30 = vld [vmem:[#allocation5 + $0x228] ss:$12 sps:$4 sm:$0xff]   ;;  %v2339_v31 = vld [vmem:[#allocation5 + $0x244] ss:$12 sps:$4 sm:$0xff]   ;;  %v2411_v51 = vld [vmem:[#allocation5 + $0x380] ss:$12 sps:$4 sm:$0xff]  }
  0x69   :  { %1120 = vmatpush1.bf16.msra.mxu0 %v2274_v18  ;;  %2078 = vmatpush3.bf16.msra.mxu1 %v2331_v39  ;;  %v2380_v18 = vld [vmem:[#allocation5 + $0x2f0] ss:$12 sps:$4 sm:$0xff]   ;;  %v2395_v33 = vld [vmem:[#allocation5 + $0x3f8] ss:$12 sps:$4 sm:$0xff]   ;;  %v2349_v39 = vld [vmem:[#allocation5 + $0x274] ss:$12 sps:$4 sm:$0xff]  }
  0x6a   :  { %1121 = vmatprep.subr.bf16.mxu0 %v2275_v21  ;;  %2079 = vmatprep.subr.bf16.mxu1 %v2335_v40  ;;  %v2327_v21 = vld [vmem:[#allocation5 + $0x210] ss:$12 sps:$4 sm:$0xff]   ;;  %v2396_v36 = vld [vmem:[#allocation5 + $0x338] ss:$12 sps:$4 sm:$0xff]  }
  0x6b   :  { %v2401_v40 = vld [vmem:[#allocation5 + $0x350] ss:$12 sps:$4 sm:$0xff]  }
  0x6c   :  { %v2384_v8 = vld [vmem:[#allocation5 + $0x31c] ss:$12 sps:$4 sm:$0xff]  }
  0x6d   :  { %1122 = vmatpush1.bf16.msra.mxu0 %v2277_v24  ;;  %2080 = vmatpush3.bf16.msra.mxu1 %v2336_v43  ;;  %v2385_v24 = vld [vmem:[#allocation5 + $0x3c8] ss:$12 sps:$4 sm:$0xff]   ;;  %v2354_v43 = vld [vmem:[#allocation5 + $0x28c] ss:$12 sps:$4 sm:$0xff]  }
  0x6e   :  { %1123 = vmatprep.subr.bf16.mxu0 %v2278_v25  ;;  %2081 = vmatprep.subr.bf16.mxu1 %v2340_v44  ;;  %v92_v25 = vld [vmem:[#allocation2 + $0x48] sm:$0xff]  ;;  %v2406_v44 = vld [vmem:[#allocation5 + $0x368] ss:$12 sps:$4 sm:$0xff]  }
  0x71   :  { %1124 = vmatpush1.bf16.msra.mxu0 %v2280_v28  ;;  %2082 = vmatpush3.bf16.msra.mxu1 %v2341_v49  ;;  %v2705_v28 = vpack.c.bf16 %v92_v25, %v85_v23  ;;  %v2352_v49 = vld [vmem:[#allocation5 + $0x288] ss:$12 sps:$4 sm:$0xff]   ;;  %v2419_v23 = vld [vmem:[#allocation5 + $0x3c4] ss:$12 sps:$4 sm:$0xff]  }
  0x72   :  { %1125 = vmatprep.subr.bf16.mxu0 %v2281_v29  ;;  %2089 = vmatprep.subr.bf16.mxu1 %v2345_v50  ;;  %v2390_v29 = vld [vmem:[#allocation5 + $0x3e0] ss:$12 sps:$4 sm:$0xff]   ;;  %v2359_v50 = vld [vmem:[#allocation5 + $0x2a4] ss:$12 sps:$4 sm:$0xff]   ;;  %v2424_v25 = vld [vmem:[#allocation5 + $0x3dc] ss:$12 sps:$4 sm:$0xff]  }
  0x74   :  { %1310 = vmatmul.mubr.bf16.vlgmr.msra.gmra.mrb[0].mxu1 %v97_v54 }
  0x75   :  { %1126 = vmatpush1.bf16.msra.mxu0 %v2283_v32  ;;  %2090 = vmatpush3.bf16.msra.mxu1 %v2346_v53  ;;  %v2391_v32 = vld [vmem:[#allocation5 + $0x320] ss:$12 sps:$4 sm:$0xff]  }
  0x76   :  { %1127 = vmatprep.subr.bf16.mxu0 %v2284_v34  ;;  %2091 = vmatprep.subr.bf16.mxu1 %v2350_v55  ;;  %v2337_v34 = vld [vmem:[#allocation5 + $0x240] ss:$12 sps:$4 sm:$0xff]   ;;  %v2416_v55 = vld [vmem:[#allocation5 + $0x398] ss:$12 sps:$4 sm:$0xff]  }
  0x77   :  { %1350 = vmatprep.mubr.bf16.mxu1 %v100_v11  ;;  %v2357_v53 = vld [vmem:[#allocation5 + $0x2a0] ss:$12 sps:$4 sm:$0xff]  }
  0x79   :  { %1128 = vmatpush1.bf16.msra.mxu0 %v2286_v37  ;;  %2092 = vmatpush3.bf16.msra.mxu1 %v2351_v58  ;;  %v2400_v37 = vld [vmem:[#allocation5 + $0x410] ss:$12 sps:$4 sm:$0xff]   ;;  %v2369_v58 = vld [vmem:[#allocation5 + $0x2d4] ss:$12 sps:$4 sm:$0xff]  }
  0x7a   :  { %1129 = vmatprep.subr.bf16.mxu0 %v2287_v38  ;;  %2093 = vmatprep.subr.bf16.mxu1 %v2355_v59  ;;  %v2342_v38 = vld [vmem:[#allocation5 + $0x258] ss:$12 sps:$4 sm:$0xff]   ;;  %v2421_v59 = vld [vmem:[#allocation5 + $0x3b0] ss:$12 sps:$4 sm:$0xff]  }
  0x7d   :  { %1130 = vmatpush1.bf16.msra.mxu0 %v2289_v41  ;;  %2094 = vmatpush3.bf16.msra.mxu1 %v2356_v62  ;;  %v2405_v41 = vld [vmem:[#allocation5 + $0x428] ss:$12 sps:$4 sm:$0xff]   ;;  %v2367_v62 = vld [vmem:[#allocation5 + $0x2d0] ss:$12 sps:$4 sm:$0xff]  }
  0x7e   :  { %1131 = vmatprep.subr.bf16.mxu0 %v2290_v42  ;;  %2095 = vmatprep.subr.bf16.mxu1 %v2360_v63  ;;  %v2347_v42 = vld [vmem:[#allocation5 + $0x270] ss:$12 sps:$4 sm:$0xff]   ;;  %v2374_v63 = vld [vmem:[#allocation5 + $0x2ec] ss:$12 sps:$4 sm:$0xff]  }
  0x81   :  { %1132 = vmatpush1.bf16.msra.mxu0 %v2292_v45  ;;  %2096 = vmatpush3.bf16.msra.mxu1 %v2361_v2  ;;  %v88_v45 = vld [vmem:[#allocation2 + $0x28] sm:$0xff]  ;;  %v2372_v2 = vld [vmem:[#allocation5 + $0x2e8] ss:$12 sps:$4 sm:$0xff]  }
  0x82   :  { %1133 = vmatprep.subr.bf16.mxu0 %v2293_v46  ;;  %2097 = vmatprep.subr.bf16.mxu1 %v2365_v3  ;;  %v95_v46 = vld [vmem:[#allocation2 + $0x60] sm:$0xff] }
  0x83   :  { %v102_v48 = vpack.c.bf16 %v95_v46, %v88_v45  ;;  %v2379_v3 = vld [vmem:[#allocation5 + $0x304] ss:$12 sps:$4 sm:$0xff]   ;;  %v2451_v46 = vld [vmem:[#allocation7 + $0x50] sm:$0xff]  }
  0x84   :  { %v2450_v45 = vld [vmem:[#allocation7 + $0x8] sm:$0xff]  }
  0x85   :  { %1134 = vmatpush1.bf16.msra.mxu0 %v2295_v47  ;;  %2098 = vmatpush3.bf16.msra.mxu1 %v2366_v6  ;;  %v2410_v47 = vld [vmem:[#allocation5 + $0x440] ss:$12 sps:$4 sm:$0xff]   ;;  %v96_v6 = vld [vmem:[#allocation2 + $0x68] sm:$0xff] }
  0x86   :  { %1135 = vmatprep.subr.bf16.mxu0 %v2296_v52  ;;  %2099 = vmatprep.subr.bf16.mxu1 %v2370_v7  ;;  %v2415_v52 = vld [vmem:[#allocation5 + $0x458] ss:$12 sps:$4 sm:$0xff]   ;;  %v2377_v7 = vld [vmem:[#allocation5 + $0x300] ss:$12 sps:$4 sm:$0xff]  }
  0x89   :  { %1136 = vmatpush1.bf16.msra.mxu0 %v2298_v56  ;;  %2100 = vmatpush3.bf16.msra.mxu1 %v2371_v13  ;;  %v2362_v56 = vld [vmem:[#allocation5 + $0x2b8] ss:$12 sps:$4 sm:$0xff]  }
  0x8a   :  { %1148 = vmatprep.subr.bf16.mxu0 %v2301_v57  ;;  %2101 = vmatprep.subr.bf16.mxu1 %v2375_v14  ;;  %v2420_v57 = vld [vmem:[#allocation5 + $0x470] ss:$12 sps:$4 sm:$0xff]   ;;  %v2394_v13 = vld [vmem:[#allocation5 + $0x34c] ss:$12 sps:$4 sm:$0xff]   ;;  %v2392_v14 = vld [vmem:[#allocation5 + $0x348] ss:$12 sps:$4 sm:$0xff]  }
  0x8c   :  { %1138 = vmatmul.mubr.bf16.vlgmr.msra.gmra.mrb[0].mxu0 %v97_v54  ;;  %v2364_v54 = vld [vmem:[#allocation5 + $0x2bc] ss:$12 sps:$4 sm:$0xff]  }
  0x8d   :  { %1149 = vmatpush1.bf16.msra.mxu0 %v2299_v60  ;;  %1180 = vmatprep.mubr.bf16.mxu0 %v100_v11  ;;  %v87_v60 = vld [vmem:[#allocation2 + $0x20] sm:$0xff] }
  0x8e   :  { %1150 = vmatprep.subr.bf16.mxu0 %v2304_v61  ;;  %2102 = vmatpush3.bf16.msra.mxu1 %v2376_v17  ;;  %v94_v61 = vld [vmem:[#allocation2 + $0x58] sm:$0xff]  ;;  %v2389_v11 = vld [vmem:[#allocation5 + $0x334] ss:$12 sps:$4 sm:$0xff]  }
  0x8f   :  { %2103 = vmatprep.subr.bf16.mxu1 %v2380_v18  ;;  %v2404_v17 = vld [vmem:[#allocation5 + $0x37c] ss:$12 sps:$4 sm:$0xff]   ;;  %v2402_v18 = vld [vmem:[#allocation5 + $0x378] ss:$12 sps:$4 sm:$0xff]  }
  0x91   :  { %1151 = vmatpush1.bf16.msra.mxu0 %v2302_v0  ;;  %v2428_v0 = vld [vmem:[#allocation5 + $0x488] ss:$12 sps:$4 sm:$0xff]  }
  0x92   :  { %1152 = vmatprep.subr.bf16.mxu0 %v2309_v1  ;;  %2104 = vmatpush3.bf16.msra.mxu1 %v2381_v22  ;;  %v2708_v1 = vpack.c.bf16 %v94_v61, %v87_v60  ;;  %v2412_v22 = vld [vmem:[#allocation5 + $0x3a8] ss:$12 sps:$4 sm:$0xff]   ;;  %v302_v60 = vlaneseq }
  0x93   :  { %2111 = vmatprep.subr.bf16.mxu1 %v2385_v24  ;;  %v2417_v24 = vld [vmem:[#allocation5 + $0x3c0] ss:$12 sps:$4 sm:$0xff]  }
  0x94   :  { %v2459_v61 = vld [vmem:[#allocation7 + $0x70] sm:$0xff]  }
  0x95   :  { %1153 = vmatpush1.bf16.msra.mxu0 %v2307_v4  ;;  %1351 = vmatmul.mubr.bf16.vlgmr.msra.gmra.mrb[4].mxu1 %v2705_v28  ;;  %v2607_v4 = vmov 0.0  }
  0x96   :  { %1154 = vmatprep.subr.bf16.mxu0 %v2314_v5  ;;  %2112 = vmatpush3.bf16.msra.mxu1 %v2386_v27  ;;  %v89_v5 = vld [vmem:[#allocation2 + $0x30] sm:$0xff] }
  0x97   :  { %2113 = vmatprep.subr.bf16.mxu1 %v2390_v29  ;;  %1391 = vmatprep.mubr.bf16.mxu1 %v102_v48  ;;  %v2714_v9 = vpack.c.bf16 %v96_v6, %v89_v5  ;;  %v2427_v27 = vld [vmem:[#allocation5 + $0x3f4] ss:$12 sps:$4 sm:$0xff]   ;;  %v2431_v29 = vld [vmem:[#allocation5 + $0x40c] ss:$12 sps:$4 sm:$0xff]  }
  0x99   :  { %1155 = vmatpush1.bf16.msra.mxu0 %v2312_v10  ;;  %v2382_v10 = vld [vmem:[#allocation5 + $0x318] ss:$12 sps:$4 sm:$0xff]  }
  0x9a   :  { %1156 = vmatprep.subr.bf16.mxu0 %v2319_v12  ;;  %2114 = vmatpush3.bf16.msra.mxu1 %v2391_v32  ;;  %v2387_v12 = vld [vmem:[#allocation5 + $0x330] ss:$12 sps:$4 sm:$0xff]   ;;  %v2432_v32 = vld [vmem:[#allocation5 + $0x420] ss:$12 sps:$4 sm:$0xff]  }
  0x9b   :  { %2115 = vmatprep.subr.bf16.mxu1 %v2395_v33  ;;  %v2437_v33 = vld [vmem:[#allocation5 + $0x43c] ss:$12 sps:$4 sm:$0xff]  }
  0x9d   :  { %1157 = vmatpush1.bf16.msra.mxu0 %v2317_v15  ;;  %v2399_v15 = vld [vmem:[#allocation5 + $0x364] ss:$12 sps:$4 sm:$0xff]  }
  0x9e   :  { %1158 = vmatprep.subr.bf16.mxu0 %v2324_v16  ;;  %2116 = vmatpush3.bf16.msra.mxu1 %v2396_v36  ;;  %v2397_v16 = vld [vmem:[#allocation5 + $0x360] ss:$12 sps:$4 sm:$0xff]   ;;  %v2438_v36 = vld [vmem:[#allocation5 + $0x450] ss:$12 sps:$4 sm:$0xff]  }
  0x9f   :  { %2117 = vmatprep.subr.bf16.mxu1 %v2400_v37  ;;  %v2443_v37 = vld [vmem:[#allocation5 + $0x46c] ss:$12 sps:$4 sm:$0xff]  }
  0xa1   :  { %1159 = vmatpush1.bf16.msra.mxu0 %v2322_v19  ;;  %v2409_v19 = vld [vmem:[#allocation5 + $0x394] ss:$12 sps:$4 sm:$0xff]  }
  0xa2   :  { %1160 = vmatprep.subr.bf16.mxu0 %v2329_v20  ;;  %2118 = vmatpush3.bf16.msra.mxu1 %v2401_v40  ;;  %v2407_v20 = vld [vmem:[#allocation5 + $0x390] ss:$12 sps:$4 sm:$0xff]   ;;  %v2444_v40 = vld [vmem:[#allocation5 + $0x480] ss:$12 sps:$4 sm:$0xff]  }
  0xa3   :  { %2119 = vmatprep.subr.bf16.mxu1 %v2405_v41  ;;  %v2609_v41 = vmov 0  }
  0xa5   :  { %1161 = vmatpush1.bf16.msra.mxu0 %v2327_v21  ;;  %v2414_v21 = vld [vmem:[#allocation5 + $0x3ac] ss:$12 sps:$4 sm:$0xff]  }
  0xa6   :  { %1162 = vmatprep.subr.bf16.mxu0 %v2334_v26  ;;  %2120 = vmatpush3.bf16.msra.mxu1 %v2406_v44  ;;  %v2422_v26 = vld [vmem:[#allocation5 + $0x3d8] ss:$12 sps:$4 sm:$0xff]  }
  0xa7   :  { %2121 = vmatprep.subr.bf16.mxu1 %v2410_v47  ;;  %v2449_v44 = vld [vmem:[#allocation7 + $0x48] sm:$0xff]   ;;  %v2452_v47 = vld [vmem:[#allocation7 + $0x10] sm:$0xff]  }
  0xa9   :  { %1163 = vmatpush1.bf16.msra.mxu0 %v2332_v30  ;;  %v2429_v30 = vld [vmem:[#allocation5 + $0x408] ss:$12 sps:$4 sm:$0xff]  }
  0xaa   :  { %1164 = vmatprep.subr.bf16.mxu0 %v2339_v31  ;;  %2122 = vmatpush3.bf16.msra.mxu1 %v2411_v51  ;;  %v2434_v31 = vld [vmem:[#allocation5 + $0x424] ss:$12 sps:$4 sm:$0xff]   ;;  %v2456_v51 = vld [vmem:[#allocation7 + $0x20] sm:$0xff]  }
  0xab   :  { %2123 = vmatprep.subr.bf16.mxu1 %v2415_v52  ;;  %v2457_v52 = vld [vmem:[#allocation7 + $0x68] sm:$0xff]  }
  0xad   :  { %1165 = vmatpush1.bf16.msra.mxu0 %v2337_v34  ;;  %v2435_v34 = vld [vmem:[#allocation5 + $0x438] ss:$12 sps:$4 sm:$0xff]  }
  0xae   :  { %1166 = vmatprep.subr.bf16.mxu0 %v2344_v35  ;;  %2124 = vmatpush3.bf16.msra.mxu1 %v2416_v55  ;;  %v2440_v35 = vld [vmem:[#allocation5 + $0x454] ss:$12 sps:$4 sm:$0xff]  }
  0xaf   :  { %2125 = vmatprep.subr.bf16.mxu1 %v2420_v57 }
  0xb1   :  { %1167 = vmatpush1.bf16.msra.mxu0 %v2342_v38  ;;  %v2441_v38 = vld [vmem:[#allocation5 + $0x468] ss:$12 sps:$4 sm:$0xff]  }
  0xb2   :  { %1168 = vmatprep.subr.bf16.mxu0 %v2349_v39  ;;  %2126 = vmatpush3.bf16.msra.mxu1 %v2421_v59  ;;  %v2446_v39 = vld [vmem:[#allocation5 + $0x484] ss:$12 sps:$4 sm:$0xff]  }
  0xb3   :  { %2175 = vmatprep.subr.bf16.mxu1 %v2607_v4 }
  0xb5   :  { %1169 = vmatpush1.bf16.msra.mxu0 %v2347_v42  ;;  %1392 = vmatmul.mubr.bf16.vlgmr.msra.gmra.mrb[8].mxu1 %v2708_v1  ;;  %v2447_v42 = vld [vmem:[#allocation7 + $0x40] sm:$0xff]  }
  0xb6   :  { %1170 = vmatprep.subr.bf16.mxu0 %v2354_v43  ;;  %2176 = vmatpush3.bf16.msra.mxu1 %v2428_v0  ;;  %v2448_v43 = vld [vmem:[#allocation7] sm:$0xff]   ;;  %v2461_v0 = vld [vmem:[#allocation7 + $0x78] sm:$0xff]  }
  0xb7   :  { %2177 = vmatprep.mubr.msk.bf16.mxu1 %vm2608_vm1, %v2607_v4  ;;  %2135 = vmatprep.subr.bf16.mxu1 %v2447_v42 }
  0xb9   :  { %1171 = vmatpush1.bf16.msra.mxu0 %v2352_v49  ;;  %v2454_v49 = vld [vmem:[#allocation7 + $0x18] sm:$0xff]  }
  0xba   :  { %1172 = vmatprep.subr.bf16.mxu0 %v2359_v50  ;;  %v2455_v50 = vld [vmem:[#allocation7 + $0x60] sm:$0xff]  }
  0xbd   :  { %1173 = vmatpush1.bf16.msra.mxu0 %v2357_v53  ;;  %2178 = vmatmul.mubr.msk.bf16.vlgmr.msra.gmra.mrb[12].mxu1 %vm1101_vm0, %v2714_v9  ;;  %v2458_v53 = vld [vmem:[#allocation7 + $0x28] sm:$0xff]  }
  0xbe   :  { %1174 = vmatprep.subr.bf16.mxu0 %v2364_v54  ;;  %2136 = vmatpush3.bf16.msra.mxu1 %v2448_v43 }
  0xbf   :  { %2137 = vmatprep.subr.bf16.mxu1 %v2449_v44 }
  0xc1   :  { %1175 = vmatpush1.bf16.msra.mxu0 %v2362_v56 }
  0xc2   :  { %1176 = vmatprep.subr.bf16.mxu0 %v2369_v58  ;;  %2138 = vmatpush3.bf16.msra.mxu1 %v2450_v45 }
  0xc3   :  { %2139 = vmatprep.subr.bf16.mxu1 %v2451_v46 }
  0xc5   :  { %1177 = vmatpush1.bf16.msra.mxu0 %v2367_v62  ;;  %v2460_v62 = vld [vmem:[#allocation7 + $0x30] sm:$0xff]  }
  0xc6   :  { %1178 = vmatprep.subr.bf16.mxu0 %v2374_v63  ;;  %2140 = vmatpush3.bf16.msra.mxu1 %v2452_v47  ;;  %v303_v63 = vshrl.u32 %v302_v60, 7  ;;  %v2472_v60 = vld [vmem:[#allocation8 + $0x8] sm:$0xff]  }
  0xc9   :  { %1179 = vmatpush1.bf16.msra.mxu0 %v2372_v2  ;;  %v312_v2 = vsub.s32 2, %v303_v63 }
  0xca   :  { %1191 = vmatprep.subr.bf16.mxu0 %v2379_v3  ;;  %v300_v3 = vld [vmem:[%s2768_s2] sm:$0x7] }
  0xcb   :  { %v313_v5 = vrot.slane %v300_v3, %v312_v2  ;;  %v2478_v2 = vld [vmem:[#allocation8 + $0x38] sm:$0xff]  }
  0xcc   :  { %1181 = vmatmul.mubr.bf16.vlgmr.msra.gmra.mrb[0].mxu0 %v2705_v28  ;;  %v2425_v28 = vld [vmem:[#allocation5 + $0x3f0] ss:$12 sps:$4 sm:$0xff]  }
  0xcd   :  { %1192 = vmatpush1.bf16.msra.mxu0 %v2377_v7  ;;  %1223 = vmatprep.mubr.bf16.mxu0 %v102_v48  ;;  %v2453_v48 = vld [vmem:[#allocation7 + $0x58] sm:$0xff]  }
  0xce   :  { %1193 = vmatprep.subr.bf16.mxu0 %v2384_v8  ;;  %2141 = vmatprep.subr.bf16.mxu1 %v2453_v48 }
  0xcf   :  { %2142 = vmatpush3.bf16.msra.mxu1 %v2454_v49 }
  0xd0   :  { %2143 = vmatprep.subr.bf16.mxu1 %v2455_v50 }
  0xd1   :  { %1194 = vmatpush1.bf16.msra.mxu0 %v2382_v10 }
  0xd2   :  { %1195 = vmatprep.subr.bf16.mxu0 %v2389_v11 }
  0xd3   :  { %2144 = vmatpush3.bf16.msra.mxu1 %v2456_v51  ;;  %v2463_v51 = vld [vmem:[#allocation7 + $0x80] sm:$0xff]  }
  0xd4   :  { %2145 = vmatprep.subr.bf16.mxu1 %v2457_v52  ;;  %v2464_v52 = vld [vmem:[#allocation7 + $0x88] sm:$0xff]  }
  0xd5   :  { %1196 = vmatpush1.bf16.msra.mxu0 %v2387_v12 }
  0xd6   :  { %1197 = vmatprep.subr.bf16.mxu0 %v2394_v13 }
  0xd7   :  { %2146 = vmatpush3.bf16.msra.mxu1 %v2458_v53  ;;  %v2465_v53 = vld [vmem:[#allocation7 + $0x90] sm:$0xff]  }
  0xd8   :  { %2147 = vmatprep.subr.bf16.mxu1 %v2459_v61  ;;  %v2473_v61 = vld [vmem:[#allocation8 + $0x10] sm:$0xff]  }
  0xd9   :  { %1198 = vmatpush1.bf16.msra.mxu0 %v2392_v14 }
  0xda   :  { %1199 = vmatprep.subr.bf16.mxu0 %v2399_v15 }
  0xdb   :  { %2148 = vmatpush3.bf16.msra.mxu1 %v2460_v62  ;;  %v2474_v62 = vld [vmem:[#allocation8 + $0x18] sm:$0xff]  }
  0xdc   :  { %2149 = vmatprep.subr.bf16.mxu1 %v2461_v0  ;;  %v2476_v0 = vld [vmem:[#allocation8 + $0x28] sm:$0xff]  }
  0xdd   :  { %1200 = vmatpush1.bf16.msra.mxu0 %v2397_v16 }
  0xde   :  { %1201 = vmatprep.subr.bf16.mxu0 %v2404_v17 }
  0xe1   :  { %1202 = vmatpush1.bf16.msra.mxu0 %v2402_v18 }
  0xe2   :  { %1203 = vmatprep.subr.bf16.mxu0 %v2409_v19 }
  0xe5   :  { %1204 = vmatpush1.bf16.msra.mxu0 %v2407_v20 }
  0xe6   :  { %1205 = vmatprep.subr.bf16.mxu0 %v2414_v21 }
  0xe9   :  { %1206 = vmatpush1.bf16.msra.mxu0 %v2412_v22 }
  0xea   :  { %1207 = vmatprep.subr.bf16.mxu0 %v2419_v23 }
  0xed   :  { %1208 = vmatpush1.bf16.msra.mxu0 %v2417_v24 }
  0xee   :  { %1209 = vmatprep.subr.bf16.mxu0 %v2424_v25 }
  0xf1   :  { %1210 = vmatpush1.bf16.msra.mxu0 %v2422_v26 }
  0xf2   :  { %1211 = vmatprep.subr.bf16.mxu0 %v2427_v27 }
  0xf5   :  { %1212 = vmatpush1.bf16.msra.mxu0 %v2425_v28 }
  0xf6   :  { %1213 = vmatprep.subr.bf16.mxu0 %v2431_v29 }
  0xf9   :  { %1214 = vmatpush1.bf16.msra.mxu0 %v2429_v30 }
  0xfa   :  { %1215 = vmatprep.subr.bf16.mxu0 %v2434_v31 }
  0xfd   :  { %1216 = vmatpush1.bf16.msra.mxu0 %v2432_v32 }
  0xfe   :  { %1217 = vmatprep.subr.bf16.mxu0 %v2437_v33  ;;  %v304_v33 = vsub.s32 0, %v303_v63 }
 0x101   :  { %1218 = vmatpush1.bf16.msra.mxu0 %v2435_v34  ;;  %v308_v34 = vsub.s32 1, %v303_v63  ;;  %v2475_v63 = vld [vmem:[#allocation8 + $0x20] sm:$0xff]  }
 0x102   :  { %1219 = vmatprep.subr.bf16.mxu0 %v2440_v35  ;;  %v305_v35 = vrot.slane %v300_v3, %v304_v33 }
 0x105   :  { %1220 = vmatpush1.bf16.msra.mxu0 %v2438_v36  ;;  %v309_v36 = vrot.slane %v300_v3, %v308_v34 }
 0x106   :  { %1221 = vmatprep.subr.bf16.mxu0 %v2443_v37 }
 0x109   :  { %1222 = vmatpush1.bf16.msra.mxu0 %v2441_v38 }
 0x10a   :  { %1234 = vmatprep.subr.bf16.mxu0 %v2446_v39 }
 0x10c   :  { %1224 = vmatmul.mubr.bf16.vlgmr.msra.gmra.mrb[0].mxu0 %v2708_v1  ;;  %v2462_v1 = vld [vmem:[#allocation7 + $0x38] sm:$0xff]  }
 0x10d   :  { %1235 = vmatpush1.bf16.msra.mxu0 %v2444_v40  ;;  %1266 = vmatprep.mubr.bf16.mxu0 %v2609_v41 }
 0x10e   :  { %2150 = vmatpush3.bf16.msra.mxu1 %v2462_v1  ;;  %v2477_v1 = vld [vmem:[#allocation8 + $0x30] sm:$0xff]  }
 0x10f   :  { %2181 = vmatprep.subr.bf16.mxu1 %v2607_v4 }
 0x118   :  { %2022 = vmatmul.mubr.msk.bf16.vlgmr.msra.gmra.mrb[0].mxu0 %vm1101_vm0, %v2714_v9 }
 0x147   :  { %v2083_v54 = vpop.f32.mrb[0].mxu1 }
 0x148   :  { %v2084_v55 = vpop.f32.mrb[1].mxu1 }
 0x149   :  { %v2085_v56 = vadd.f32 %v2084_v55, %v2083_v54  ;;  %v2086_v57 = vpop.f32.mrb[2].mxu1  ;;  %v2466_v54 = vld [vmem:[#allocation7 + $0x98] sm:$0xff]   ;;  %v2467_v55 = vld [vmem:[#allocation7 + $0xa0] sm:$0xff]  }
 0x14a   :  { %v2087_v58 = vpop.f32.mrb[3].mxu1 }
 0x14b   :  { %v2088_v59 = vadd.f32 %v2087_v58, %v2086_v57  ;;  %v1312_v6 = vadd.f32 %v2085_v56, %v313_v5  ;;  %v2468_v56 = vld [vmem:[#allocation7 + $0xa8] sm:$0xff]   ;;  %v2469_v57 = vld [vmem:[#allocation7 + $0xb0] sm:$0xff]   ;;  %v2470_v58 = vld [vmem:[#allocation7 + $0xb8] sm:$0xff]  }
 0x14d   :  { %v1315_v9 = vadd.f32 %v2088_v59, %v313_v5  ;;  %v2471_v59 = vld [vmem:[#allocation8] sm:$0xff]  }
 0x168   :  { %v2105_v7 = vpop.f32.mrb[4].mxu1 }
 0x169   :  { %v2106_v8 = vpop.f32.mrb[5].mxu1 }
 0x16a   :  { %v2107_v10 = vadd.f32 %v2106_v8, %v2105_v7  ;;  %v2108_v11 = vpop.f32.mrb[6].mxu1 }
 0x16b   :  { %v2109_v12 = vpop.f32.mrb[7].mxu1 }
 0x16c   :  { %v1353_v13 = vadd.f32 %v2107_v10, %v1312_v6  ;;  %v2110_v14 = vadd.f32 %v2109_v12, %v2108_v11  ;;  %v2024_v10 = vld [vmem:[%s2770_s4] ss:$0 sm:$0xff]  ;;  %s2610_s4 = smov [#allocation10]  }
 0x16d   :  { %s1861_s9 = sshll.u32 %s2610_s4, 4  ;;  %s1862_s9 = int_to_ptr.vmem [resolvable:$true] %s1861_s9 }
 0x16e   :  { %v1356_v15 = vadd.f32 %v2110_v14, %v1315_v9  ;;  %s2567_s10 = scalar_lea.vmem %s1862_s9, 128  ;;  %p2572_p5 = scmp.lt.s32.totalorder %s1862_s9, %s1862_s9 }
 0x16f   :  { %p2568_p4 = scmp.ne.s32.totalorder %s1862_s9, %s2567_s10  ;;  %p2573_p6 = scmp.lt.s32.totalorder %s2567_s10, %s2567_s10 }
 0x171   :  { %p2574_p7 = por %p2573_p6, %p2572_p5 }
 0x173   :  { %p2575_p8 = pnand %p2574_p7, %p2568_p4 }
 0x188   :  { %v2127_v16 = vpop.f32.mrb[8].mxu1 }
 0x189   :  { %v2128_v17 = vpop.f32.mrb[9].mxu1 }
 0x18a   :  { %v2129_v18 = vadd.f32 %v2128_v17, %v2127_v16  ;;  %v2130_v19 = vpop.f32.mrb[10].mxu1 }
 0x18b   :  { %v2131_v20 = vpop.f32.mrb[11].mxu1 }
 0x18c   :  { %v2132_v21 = vadd.f32 %v2131_v20, %v2130_v19  ;;  %v1394_v22 = vadd.f32 %v2129_v18, %v1353_v13 }
 0x18e   :  { %v1397_v23 = vadd.f32 %v2132_v21, %v1356_v15  ;;  %v2049_v21 = vld [vmem:[%s2772_s6] ss:$0 sm:$0xff] }
 0x190   :  { %v1434_v24 = vpop.f32.mrb[12].mxu1 }
 0x191   :  { %v1435_v25 = vadd.f32 %v1434_v24, %v1394_v22  ;;  %v2179_v26 = vpop.f32.mrb[13].mxu1 }
 0x192   :  { %v1437_v27 = vpop.f32.mrb[14].mxu1 }
 0x193   :  { %v1443_v28 = vmax.f32 %v1435_v25, 0.0  ;;  %v1438_v29 = vadd.f32 %v1437_v27, %v1397_v23  ;;  %v2180_v30 = vpop.f32.mrb[15].mxu1 }
 0x195   :  { %v1446_v31 = vmax.f32 %v1438_v29, 0.0 }
 0x197   :  { %v1449_v32 = vpack.c.bf16 %v1446_v31, %v1443_v28 }
 0x1eb   :  { %v1268_v37 = vpop.f32.mrb[0].mxu0 }
 0x1ec   :  { %v2221_v38 = vadd.f32 %v1268_v37, %v305_v35  ;;  %v1270_v39 = vpop.f32.mrb[1].mxu0 }
 0x1ed   :  { %v2222_v40 = vadd.f32 %v1270_v39, %v309_v36  ;;  %v1272_v41 = vpop.f32.mrb[2].mxu0 }
 0x1ee   :  { %v2223_v42 = vadd.f32 %v1272_v41, %v305_v35  ;;  %v1274_v43 = vpop.f32.mrb[3].mxu0  ;;  %v1441_v45 = vmax.f32 %v2221_v38, 0.0 }
 0x1ef   :  { %v2224_v44 = vadd.f32 %v1274_v43, %v309_v36  ;;  %v1442_v47 = vmax.f32 %v2222_v40, 0.0 }
 0x1f0   :  { %v1444_v46 = vmax.f32 %v2223_v42, 0.0 }
 0x1f1   :  { %v1445_v48 = vmax.f32 %v2224_v44, 0.0 }
 0x1f2   :  { %v1447_v49 = vpack.c.bf16 %v1444_v46, %v1441_v45 }
 0x1f3   :  { %v1448_v50 = vpack.c.bf16 %v1445_v48, %v1442_v47 }
 0x1f5   :  { %1681 = vmatprep.mubr.bf16.mxu1 %v1448_v50 }
 0x1f6   :  { %1682 = vmatmul.mubr.bf16.vlgmr.msra.gmra.mrb[16].mxu1 %v1447_v49 }
 0x1f7   :  { %2182 = vmatpush3.bf16.msra.mxu1 %v2463_v51  ;;  %2197 = vmatprep.mubr.msk.bf16.mxu1 %vm2608_vm1, %v2607_v4 }
 0x1f8   :  { %2183 = vmatprep.subr.bf16.mxu1 %v2607_v4 }
 0x1fb   :  { %2184 = vmatpush3.bf16.msra.mxu1 %v2464_v52 }
 0x1fc   :  { %2185 = vmatprep.subr.bf16.mxu1 %v2607_v4 }
 0x1ff   :  { %2186 = vmatpush3.bf16.msra.mxu1 %v2465_v53 }
 0x200   :  { %2187 = vmatprep.subr.bf16.mxu1 %v2607_v4 }
 0x203   :  { %2188 = vmatpush3.bf16.msra.mxu1 %v2466_v54 }
 0x204   :  { %2189 = vmatprep.subr.bf16.mxu1 %v2607_v4 }
 0x207   :  { %2190 = vmatpush3.bf16.msra.mxu1 %v2467_v55 }
 0x208   :  { %2191 = vmatprep.subr.bf16.mxu1 %v2607_v4 }
 0x20b   :  { %2192 = vmatpush3.bf16.msra.mxu1 %v2468_v56 }
 0x20c   :  { %2193 = vmatprep.subr.bf16.mxu1 %v2607_v4 }
 0x20f   :  { %2194 = vmatpush3.bf16.msra.mxu1 %v2469_v57 }
 0x210   :  { %2195 = vmatprep.subr.bf16.mxu1 %v2607_v4 }
 0x213   :  { %2196 = vmatpush3.bf16.msra.mxu1 %v2470_v58 }
 0x214   :  { %2201 = vmatprep.subr.bf16.mxu1 %v2607_v4 }
 0x216   :  { %2198 = vmatmul.mubr.bf16.vlgmr.msra.gmra.mrb[20].mxu1 %v1449_v32 }
 0x217   :  { %2217 = vmatprep.mubr.msk.bf16.mxu1 %vm2608_vm1, %v2607_v4  ;;  %2202 = vmatpush3.bf16.msra.mxu1 %v2471_v59 }
 0x218   :  { %2203 = vmatprep.subr.bf16.mxu1 %v2607_v4 }
 0x21b   :  { %2204 = vmatpush3.bf16.msra.mxu1 %v2472_v60 }
 0x21c   :  { %2205 = vmatprep.subr.bf16.mxu1 %v2607_v4 }
 0x21f   :  { %2206 = vmatpush3.bf16.msra.mxu1 %v2473_v61 }
 0x220   :  { %2207 = vmatprep.subr.bf16.mxu1 %v2607_v4 }
 0x223   :  { %2208 = vmatpush3.bf16.msra.mxu1 %v2474_v62 }
 0x224   :  { %2209 = vmatprep.subr.bf16.mxu1 %v2607_v4 }
 0x227   :  { %2210 = vmatpush3.bf16.msra.mxu1 %v2475_v63 }
 0x228   :  { %2211 = vmatprep.subr.bf16.mxu1 %v2607_v4 }
 0x22b   :  { %2212 = vmatpush3.bf16.msra.mxu1 %v2476_v0 }
 0x22c   :  { %2213 = vmatprep.subr.bf16.mxu1 %v2607_v4 }
 0x22f   :  { %2214 = vmatpush3.bf16.msra.mxu1 %v2477_v1 }
 0x230   :  { %2215 = vmatprep.subr.bf16.mxu1 %v2607_v4 }
 0x233   :  { %2216 = vmatpush3.bf16.msra.mxu1 %v2478_v2 }
 0x2c9   :  { %v2151_v3 = vpop.f32.mrb[16].mxu1 }
 0x2ca   :  { %v2152_v5 = vpop.f32.mrb[17].mxu1 }
 0x2cb   :  { %v2153_v6 = vadd.f32 %v2152_v5, %v2151_v3  ;;  %v2154_v7 = vpop.f32.mrb[18].mxu1 }
 0x2cc   :  { %v2155_v8 = vpop.f32.mrb[19].mxu1 }
 0x2cd   :  { %v2156_v9 = vadd.f32 %v2155_v8, %v2154_v7  ;;  %v1684_v11 = vadd.f32 %v2153_v6, %v2024_v10 }
 0x2cf   :  { %v1687_v15 = vadd.f32 %v2156_v9, %v2024_v10 }
 0x2e9   :  { %v1724_v12 = vpop.f32.mrb[20].mxu1 }
 0x2ea   :  { %v1725_v13 = vadd.f32 %v1724_v12, %v1684_v11  ;;  %v2199_v14 = vpop.f32.mrb[21].mxu1 }
 0x2eb   :  { %v1727_v16 = vpop.f32.mrb[22].mxu1 }
 0x2ec   :  { %v1728_v17 = vadd.f32 %v1727_v16, %v1687_v15  ;;  %v2200_v4 = vpop.f32.mrb[23].mxu1  ;;  %v1731_v18 = vmax.f32 %v1725_v13, 0.0 }
 0x2ee   :  { %v1732_v19 = vmax.f32 %v1728_v17, 0.0 }
 0x2f0   :  { %v1733_v20 = vpack.c.bf16 %v1732_v19, %v1731_v18 }
 0x2f2   :  { %2218 = vmatmul.mubr.bf16.vlgmr.msra.gmra.mrb[24].mxu1 %v1733_v20 }
 0x3c5   :  { %v1839_v22 = vpop.f32.mrb[24].mxu1 }
 0x3c6   :  { %v2219_v23 = vpop.f32.mrb[25].mxu1  ;;  %v1840_v25 = vadd.f32 %v2049_v21, %v1839_v22 }
 0x3c7   :  { %v1842_v24 = vpop.f32.mrb[26].mxu1 }
 0x3c8   :  { %v1843_v26 = vadd.f32 %v2049_v21, %v1842_v24  ;;  %v2220_v27 = vpop.f32.mrb[27].mxu1 }
 0x3ca   :  { %v2065_v28 = vpack.c.bf16 %v1843_v26, %v1840_v25 }
 0x3cc   :  { %2066 = vst [vmem:[#allocation10] sm:$0xff] %v2065_v28  }
 0x3cd   :  { %2578 = shalt.err (!%p2575_p8)
}
 0x3ce   :  { %s2579_s12 = scalar_lea.hbm %s2773_s7, 128 }
 0x3cf   :  { %p2580_p9 = scmp.ne.s32.totalorder %s2773_s7, %s2579_s12  ;;  %p2583_p10 = scmp.lt.u32.totalorder %s2579_s12, %s2773_s7 }
 0x3d1   :  { %p2585_p11 = pnand %p2583_p10, %p2580_p9 }
 0x3d3   :  { %2588 = shalt.err (!%p2585_p11)
}
 0x3d4   :  { %1867 = dma.vmem_to_hbm [thread:$0]  %s1862_s9, 128, %s2773_s7, [#allocation4], %s2604_s0, %s2604_s0, %s2605_s15  }
 0x3d5   :  { %2595 = dma.done.wait [#allocation4], 128  }
 0x3d6   :  { %2596 = vsyncadd [#allocation4], 4294967168 }
 0x3d7   :  { %1871 = vsyncpa [#allocation3], 1 }
 0x3d8   :  { %1872 = vsyncpa [#allocation6], 1 }
 0x3d9   :  { %1873 = vsyncpa [#allocation9], 1 }
 0x3da   :  { %1874 = vsyncpa [#allocation4], 1 }

</bundles_post_ra>
